<compile_context>
chip_gen: v5e
topology: v5e:2x2
jax: 0.10.0
libtpu: 0.0.40
codegen_flags: <defaults>
</compile_context>

<pallas_src>
import math
from functools import partial

import jax
import jax.numpy as jnp
from jax.experimental import pallas as pl
from jax.experimental.pallas import tpu as pltpu

HIDDEN = 64
FUSED_W = 2 * HIDDEN          # 128-wide fused hidden / output head
LOG_2PI = math.log(2.0 * math.pi)


def _round_up(x, m):
    return ((x + m - 1) // m) * m


def _fused_ac_kernel(
    # inputs
    const_ref,            # SMEM (1,1): -0.5*(logdet + A*log(2*pi))
    state_ref,            # VMEM (TB, S)  f32
    action_ref,           # VMEM (TB, A)  f32
    inv_var_ref,          # VMEM (1, A)   f32
    w1_ref, b1_ref,       # (S,128) bf16, (1,128) f32
    w2_ref, b2_ref,       # (128,128) bf16, (1,128) f32
    w3_ref, b3_ref,       # (128,128) bf16, (1,128) f32
    # output
    out_ref,              # VMEM (TB, 2): lane0=log_prob, lane1=value
    *, action_dim, value_lane,
):
    bf16 = jnp.bfloat16
    x = state_ref[...].astype(bf16)                                # [TB, S]

    # fused actor||critic MLP (block-diagonal weights keep paths separate),
    # bf16 MXU matmuls with f32 accumulation, f32 bias/tanh.
    h1 = jnp.tanh(jnp.dot(x, w1_ref[...],
                          preferred_element_type=jnp.float32) + b1_ref[...])
    h2 = jnp.tanh(jnp.dot(h1.astype(bf16), w2_ref[...],
                          preferred_element_type=jnp.float32) + b2_ref[...])
    z3 = jnp.dot(h2.astype(bf16), w3_ref[...],
                 preferred_element_type=jnp.float32) + b3_ref[...]  # [TB,128]

    # actor mean lives in lanes 0..A-1 (tanh'd); critic value in lane A (raw).
    mean = jnp.tanh(z3[:, :action_dim])                            # [TB, A]
    value = z3[:, value_lane:value_lane + 1]                       # [TB, 1]

    # MultivariateNormal(action_mean, diag(var)) log_prob
    diff = action_ref[...] - mean                                  # [TB, A]
    quad = jnp.sum(diff * diff * inv_var_ref[...],
                   axis=-1, keepdims=True)                         # [TB, 1]
    logp = -0.5 * quad + const_ref[0, 0]                           # [TB, 1]

    # packed (TB, 2) output: lane 0 = log_prob, lane 1 = value
    out_ref[:, 0:1] = logp
    out_ref[:, 1:2] = value


def actor_critic_evaluate(state, action, action_var, packed, *, block_rows=512):
    """packed: dict with fused weights w1,b1,w2,b2,w3,b3 (see pack_params)."""
    f32 = jnp.float32
    B, S = state.shape
    A = action.shape[-1]
    W = FUSED_W
    assert A + 1 <= W, "action_dim too large for fused 128-wide head"

    # batch tiling: small tiles (>= 85% of HBM roofline at 512) and row-only
    # padding, applied only when actually needed.
    TB = min(block_rows, _round_up(B, 8))
    Bp = _round_up(B, TB)
    grid = (Bp // TB,)

    state_f = state.astype(f32)
    action_f = action.astype(f32)
    if Bp != B:
        pad = Bp - B
        state_f = jnp.pad(state_f, ((0, pad), (0, 0)))
        action_f = jnp.pad(action_f, ((0, pad), (0, 0)))

    var = action_var.reshape(-1).astype(f32)                       # [A]
    inv_var = (1.0 / var).reshape(1, A)                            # [1, A]
    logdet = jnp.sum(jnp.log(var))
    const = jnp.reshape(-0.5 * (logdet + A * LOG_2PI), (1, 1)).astype(f32)

    w1, b1, w2, b2, w3, b3 = (packed[k] for k in ("w1", "b1", "w2", "b2",
                                                  "w3", "b3"))

    def batch_spec(cols):
        return pl.BlockSpec((TB, cols), lambda i: (i, 0))

    def resident(shape):
        return pl.BlockSpec(shape, lambda i: (0, 0))

    out = pl.pallas_call(
        partial(_fused_ac_kernel, action_dim=A, value_lane=A),
        out_shape=jax.ShapeDtypeStruct((Bp, 2), f32),
        grid=grid,
        in_specs=[
            pl.BlockSpec(memory_space=pltpu.MemorySpace.SMEM),     # const
            batch_spec(S),                                         # state
            batch_spec(A),                                         # action
            resident((1, A)),                                      # inv_var
            resident((S, W)), resident((1, W)),                    # w1, b1
            resident((W, W)), resident((1, W)),                    # w2, b2
            resident((W, W)), resident((1, W)),                    # w3, b3
        ],
        out_specs=pl.BlockSpec((TB, 2), lambda i: (i, 0)),
        compiler_params=pltpu.CompilerParams(
            dimension_semantics=("parallel",),
            vmem_limit_bytes=32 * 1024 * 1024),
    )(const, state_f, action_f, inv_var, w1, b1, w2, b2, w3, b3)

    logp = out[:B, 0]                                              # [B]
    value = out[:B, 1:2]                                           # [B,1]
    # entropy of N(mean, diag(var)) is batch-independent -> pure wrapper math
    ent_scalar = (0.5 * A * (1.0 + LOG_2PI) + 0.5 * logdet).astype(f32)
    entropy = jnp.broadcast_to(ent_scalar, (B,))
    return logp, value, entropy


def init_params(key, state_dim, action_dim):
    """Per-layer params mimicking nn.Linear init (uniform +-1/sqrt(fan_in))."""
    def linear(key, fan_in, fan_out):
        kw, kb = jax.random.split(key)
        lim = 1.0 / math.sqrt(fan_in)
        w = jax.random.uniform(kw, (fan_in, fan_out), jnp.float32, -lim, lim)
        b = jax.random.uniform(kb, (1, fan_out), jnp.float32, -lim, lim)
        return w, b

    keys = jax.random.split(key, 6)
    aw1, ab1 = linear(keys[0], state_dim, HIDDEN)
    aw2, ab2 = linear(keys[1], HIDDEN, HIDDEN)
    aw3, ab3 = linear(keys[2], HIDDEN, action_dim)
    cw1, cb1 = linear(keys[3], state_dim, HIDDEN)
    cw2, cb2 = linear(keys[4], HIDDEN, HIDDEN)
    cw3, cb3 = linear(keys[5], HIDDEN, 1)
    return dict(aw1=aw1, ab1=ab1, aw2=aw2, ab2=ab2, aw3=aw3, ab3=ab3,
                cw1=cw1, cb1=cb1, cw2=cw2, cb2=cb2, cw3=cw3, cb3=cb3)


def pack_params(p, state_dim, action_dim):
    """Pack actor+critic layers into one 128-wide fused network (done once).

    Weights are stored bf16 (MXU-native); biases stay f32 (added after the
    f32-accumulated matmul).
    """
    H, W, A = HIDDEN, FUSED_W, action_dim
    f32, bf16 = jnp.float32, jnp.bfloat16
    w1 = jnp.concatenate([p["aw1"], p["cw1"]], axis=1).astype(bf16)  # [S,128]
    b1 = jnp.concatenate([p["ab1"], p["cb1"]], axis=1).astype(f32)   # [1,128]
    w2 = jnp.zeros((W, W), f32).at[:H, :H].set(p["aw2"]) \
                               .at[H:, H:].set(p["cw2"]).astype(bf16)  # blockdiag
    b2 = jnp.concatenate([p["ab2"], p["cb2"]], axis=1).astype(f32)
    w3 = jnp.zeros((W, W), f32).at[:H, :A].set(p["aw3"]) \
                               .at[H:, A:A + 1].set(p["cw3"]).astype(bf16)
    b3 = jnp.zeros((1, W), f32).at[0, :A].set(p["ab3"][0]) \
                               .at[0, A].set(p["cb3"][0, 0])
    return dict(w1=w1, b1=b1, w2=w2, b2=b2, w3=w3, b3=b3)


def reference_evaluate(state, action, action_var, p):
    """Pure-JAX f32 reference mirroring torch ActorCritic.evaluate semantics."""
    h = jnp.tanh(state @ p["aw1"] + p["ab1"])
    h = jnp.tanh(h @ p["aw2"] + p["ab2"])
    mean = jnp.tanh(h @ p["aw3"] + p["ab3"])
    g = jnp.tanh(state @ p["cw1"] + p["cb1"])
    g = jnp.tanh(g @ p["cw2"] + p["cb2"])
    value = g @ p["cw3"] + p["cb3"]
    var = action_var.reshape(-1)
    k = action.shape[-1]
    diff = action - mean
    logp = -0.5 * (jnp.sum(diff * diff / var, axis=-1)
                   + jnp.sum(jnp.log(var)) + k * LOG_2PI)
    ent = jnp.broadcast_to(
        0.5 * k * (1.0 + LOG_2PI) + 0.5 * jnp.sum(jnp.log(var)),
        (state.shape[0],)).astype(jnp.float32)
    return logp, value, ent


if __name__ == "__main__":
    state_dim, action_dim, batch = 8, 4, 8
    action_std_init = 0.6

    key = jax.random.PRNGKey(0)
    k_params, k_state, k_action = jax.random.split(key, 3)

    params = init_params(k_params, state_dim, action_dim)
    packed = pack_params(params, state_dim, action_dim)      # pack once

    state = jax.random.normal(k_state, (batch, state_dim), jnp.float32)
    action = jax.random.normal(k_action, (batch, action_dim), jnp.float32)
    action_var = jnp.full((action_dim,), action_std_init * action_std_init,
                          jnp.float32)

    logp, value, ent = actor_critic_evaluate(state, action, action_var, packed)
    jax.block_until_ready((logp, value, ent))

    # sanity check against pure-JAX f32 reference.  Tolerances are loosened
    # vs. the previous all-f32 kernel because the matmuls now run in bf16
    # (acceptable for PPO per the perf review).
    rl, rv, re = reference_evaluate(state, action, action_var, params)
    assert logp.shape == (batch,) and value.shape == (batch, 1) and ent.shape == (batch,)
    assert jnp.allclose(logp, rl, atol=1e-1, rtol=2e-2), "log_prob mismatch"
    assert jnp.allclose(value, rv, atol=5e-2, rtol=2e-2), "state_value mismatch"
    assert jnp.allclose(ent, re, atol=1e-5), "entropy mismatch"

    print("KERNEL_OK")
</pallas_src>

<mosaic_0001>
module attributes {stable_mosaic.version = 11 : i64} {
  func.func @_fused_ac_kernel(%arg0: i32, %arg1: memref<1x1xf32, #tpu.memory_space<smem>>, %arg2: memref<8x8xf32, #tpu.memory_space<vmem>>, %arg3: memref<8x4xf32, #tpu.memory_space<vmem>>, %arg4: memref<1x4xf32, #tpu.memory_space<vmem>>, %arg5: memref<8x128xbf16, #tpu.memory_space<vmem>>, %arg6: memref<1x128xf32, #tpu.memory_space<vmem>>, %arg7: memref<128x128xbf16, #tpu.memory_space<vmem>>, %arg8: memref<1x128xf32, #tpu.memory_space<vmem>>, %arg9: memref<128x128xbf16, #tpu.memory_space<vmem>>, %arg10: memref<1x128xf32, #tpu.memory_space<vmem>>, %arg11: memref<8x2xf32, #tpu.memory_space<vmem>>) attributes {dimension_semantics = [#tpu.dimension_semantics<parallel>], iteration_bounds = array<i64: 1>, scalar_prefetch = 0 : i64, scratch_operands = 0 : i64, tpu.core_type = #tpu.core_type<tc>, window_params = [{transform_indices = @transform_0, window_bounds = array<i64: 1, 1>}, {transform_indices = @transform_1, window_bounds = array<i64: 8, 8>}, {transform_indices = @transform_2, window_bounds = array<i64: 8, 4>}, {pipeline_mode = #tpu.pipeline_mode<synchronous>, transform_indices = @transform_3, window_bounds = array<i64: 1, 4>}, {pipeline_mode = #tpu.pipeline_mode<synchronous>, transform_indices = @transform_4, window_bounds = array<i64: 8, 128>}, {pipeline_mode = #tpu.pipeline_mode<synchronous>, transform_indices = @transform_5, window_bounds = array<i64: 1, 128>}, {pipeline_mode = #tpu.pipeline_mode<synchronous>, transform_indices = @transform_6, window_bounds = array<i64: 128, 128>}, {pipeline_mode = #tpu.pipeline_mode<synchronous>, transform_indices = @transform_7, window_bounds = array<i64: 1, 128>}, {pipeline_mode = #tpu.pipeline_mode<synchronous>, transform_indices = @transform_8, window_bounds = array<i64: 128, 128>}, {pipeline_mode = #tpu.pipeline_mode<synchronous>, transform_indices = @transform_9, window_bounds = array<i64: 1, 128>}, {transform_indices = @transform_10, window_bounds = array<i64: 8, 2>}]} {
    %c0 = arith.constant 0 : index
    %c0_0 = arith.constant 0 : index
    %0 = vector.load %arg2[%c0, %c0_0] : memref<8x8xf32, #tpu.memory_space<vmem>>, vector<8x8xf32>
    %1 = arith.truncf %0 : vector<8x8xf32> to vector<8x8xbf16>
    %c0_1 = arith.constant 0 : index
    %c0_2 = arith.constant 0 : index
    %2 = vector.load %arg5[%c0_1, %c0_2] : memref<8x128xbf16, #tpu.memory_space<vmem>>, vector<8x128xbf16>
    %cst = arith.constant dense<0.000000e+00> : vector<8x128xf32>
    %3 = tpu.matmul %1, %2, %cst {dimension_numbers = #tpu.dot_dimension_numbers<[1], [0], [0], [1], [0, 0, 1, 1], [], []>} : vector<8x8xbf16>, vector<8x128xbf16>, vector<8x128xf32> -> vector<8x128xf32>
    %c0_3 = arith.constant 0 : index
    %c0_4 = arith.constant 0 : index
    %4 = vector.load %arg6[%c0_3, %c0_4] : memref<1x128xf32, #tpu.memory_space<vmem>>, vector<1x128xf32>
    %5 = vector.broadcast %4 : vector<1x128xf32> to vector<8x128xf32>
    %6 = arith.addf %3, %5 : vector<8x128xf32>
    %7 = math.tanh %6 : vector<8x128xf32>
    %8 = arith.truncf %7 : vector<8x128xf32> to vector<8x128xbf16>
    %c0_5 = arith.constant 0 : index
    %c0_6 = arith.constant 0 : index
    %9 = vector.load %arg7[%c0_5, %c0_6] : memref<128x128xbf16, #tpu.memory_space<vmem>>, vector<128x128xbf16>
    %cst_7 = arith.constant dense<0.000000e+00> : vector<8x128xf32>
    %10 = tpu.matmul %8, %9, %cst_7 {dimension_numbers = #tpu.dot_dimension_numbers<[1], [0], [0], [1], [0, 0, 1, 1], [], []>} : vector<8x128xbf16>, vector<128x128xbf16>, vector<8x128xf32> -> vector<8x128xf32>
    %c0_8 = arith.constant 0 : index
    %c0_9 = arith.constant 0 : index
    %11 = vector.load %arg8[%c0_8, %c0_9] : memref<1x128xf32, #tpu.memory_space<vmem>>, vector<1x128xf32>
    %12 = vector.broadcast %11 : vector<1x128xf32> to vector<8x128xf32>
    %13 = arith.addf %10, %12 : vector<8x128xf32>
    %14 = math.tanh %13 : vector<8x128xf32>
    %15 = arith.truncf %14 : vector<8x128xf32> to vector<8x128xbf16>
    %c0_10 = arith.constant 0 : index
    %c0_11 = arith.constant 0 : index
    %16 = vector.load %arg9[%c0_10, %c0_11] : memref<128x128xbf16, #tpu.memory_space<vmem>>, vector<128x128xbf16>
    %cst_12 = arith.constant dense<0.000000e+00> : vector<8x128xf32>
    %17 = tpu.matmul %15, %16, %cst_12 {dimension_numbers = #tpu.dot_dimension_numbers<[1], [0], [0], [1], [0, 0, 1, 1], [], []>} : vector<8x128xbf16>, vector<128x128xbf16>, vector<8x128xf32> -> vector<8x128xf32>
    %c0_13 = arith.constant 0 : index
    %c0_14 = arith.constant 0 : index
    %18 = vector.load %arg10[%c0_13, %c0_14] : memref<1x128xf32, #tpu.memory_space<vmem>>, vector<1x128xf32>
    %19 = vector.broadcast %18 : vector<1x128xf32> to vector<8x128xf32>
    %20 = arith.addf %17, %19 : vector<8x128xf32>
    %21 = vector.extract_strided_slice %20 {offsets = [0, 0], sizes = [8, 4], strides = [1, 1]} : vector<8x128xf32> to vector<8x4xf32>
    %22 = math.tanh %21 : vector<8x4xf32>
    %23 = vector.extract_strided_slice %20 {offsets = [0, 4], sizes = [8, 1], strides = [1, 1]} : vector<8x128xf32> to vector<8x1xf32>
    %c0_15 = arith.constant 0 : index
    %c0_16 = arith.constant 0 : index
    %24 = vector.load %arg3[%c0_15, %c0_16] : memref<8x4xf32, #tpu.memory_space<vmem>>, vector<8x4xf32>
    %25 = arith.subf %24, %22 : vector<8x4xf32>
    %26 = arith.mulf %25, %25 : vector<8x4xf32>
    %c0_17 = arith.constant 0 : index
    %c0_18 = arith.constant 0 : index
    %27 = vector.load %arg4[%c0_17, %c0_18] : memref<1x4xf32, #tpu.memory_space<vmem>>, vector<1x4xf32>
    %28 = vector.broadcast %27 : vector<1x4xf32> to vector<8x4xf32>
    %29 = arith.mulf %26, %28 : vector<8x4xf32>
    %cst_19 = arith.constant dense<0.000000e+00> : vector<8xf32>
    %30 = vector.multi_reduction <add>, %29, %cst_19 [1] : vector<8x4xf32> to vector<8xf32>
    %31 = vector.shape_cast %30 : vector<8xf32> to vector<8x1xf32>
    %cst_20 = arith.constant -5.000000e-01 : f32
    %32 = vector.broadcast %cst_20 : f32 to vector<8x1xf32>
    %33 = arith.mulf %32, %31 : vector<8x1xf32>
    %c0_21 = arith.constant 0 : index
    %c0_22 = arith.constant 0 : index
    %34 = memref.load %arg1[%c0_21, %c0_22] : memref<1x1xf32, #tpu.memory_space<smem>>
    %35 = vector.broadcast %34 : f32 to vector<8x1xf32>
    %36 = arith.addf %33, %35 : vector<8x1xf32>
    %c0_23 = arith.constant 0 : index
    %c0_24 = arith.constant 0 : index
    %37 = vector.load %arg11[%c0_23, %c0_24] : memref<8x2xf32, #tpu.memory_space<vmem>>, vector<8x1xf32>
    tpu.vector_store %arg11[%c0_23, %c0_24], %36 {strides = array<i32>} : memref<8x2xf32, #tpu.memory_space<vmem>>, vector<8x1xf32>,
    %c0_25 = arith.constant 0 : index
    %c1 = arith.constant 1 : index
    %38 = vector.load %arg11[%c0_25, %c1] : memref<8x2xf32, #tpu.memory_space<vmem>>, vector<8x1xf32>
    tpu.vector_store %arg11[%c0_25, %c1], %23 {strides = array<i32>} : memref<8x2xf32, #tpu.memory_space<vmem>>, vector<8x1xf32>,
    return
  }
  func.func @transform_0(%arg0: i32) -> (i32, i32) {
    %c0_i32 = arith.constant 0 : i32
    %c0_i32_0 = arith.constant 0 : i32
    %c0_i32_1 = arith.constant 0 : i32
    return %c0_i32, %c0_i32_0 : i32, i32
  }
  func.func @transform_1(%arg0: i32) -> (i32, i32) {
    %c0_i32 = arith.constant 0 : i32
    %c0_i32_0 = arith.constant 0 : i32
    return %arg0, %c0_i32 : i32, i32
  }
  func.func @transform_2(%arg0: i32) -> (i32, i32) {
    %c0_i32 = arith.constant 0 : i32
    %c0_i32_0 = arith.constant 0 : i32
    return %arg0, %c0_i32 : i32, i32
  }
  func.func @transform_3(%arg0: i32) -> (i32, i32) {
    %c0_i32 = arith.constant 0 : i32
    %c0_i32_0 = arith.constant 0 : i32
    %c0_i32_1 = arith.constant 0 : i32
    return %c0_i32, %c0_i32_0 : i32, i32
  }
  func.func @transform_4(%arg0: i32) -> (i32, i32) {
    %c0_i32 = arith.constant 0 : i32
    %c0_i32_0 = arith.constant 0 : i32
    %c0_i32_1 = arith.constant 0 : i32
    return %c0_i32, %c0_i32_0 : i32, i32
  }
  func.func @transform_5(%arg0: i32) -> (i32, i32) {
    %c0_i32 = arith.constant 0 : i32
    %c0_i32_0 = arith.constant 0 : i32
    %c0_i32_1 = arith.constant 0 : i32
    return %c0_i32, %c0_i32_0 : i32, i32
  }
  func.func @transform_6(%arg0: i32) -> (i32, i32) {
    %c0_i32 = arith.constant 0 : i32
    %c0_i32_0 = arith.constant 0 : i32
    %c0_i32_1 = arith.constant 0 : i32
    return %c0_i32, %c0_i32_0 : i32, i32
  }
  func.func @transform_7(%arg0: i32) -> (i32, i32) {
    %c0_i32 = arith.constant 0 : i32
    %c0_i32_0 = arith.constant 0 : i32
    %c0_i32_1 = arith.constant 0 : i32
    return %c0_i32, %c0_i32_0 : i32, i32
  }
  func.func @transform_8(%arg0: i32) -> (i32, i32) {
    %c0_i32 = arith.constant 0 : i32
    %c0_i32_0 = arith.constant 0 : i32
    %c0_i32_1 = arith.constant 0 : i32
    return %c0_i32, %c0_i32_0 : i32, i32
  }
  func.func @transform_9(%arg0: i32) -> (i32, i32) {
    %c0_i32 = arith.constant 0 : i32
    %c0_i32_0 = arith.constant 0 : i32
    %c0_i32_1 = arith.constant 0 : i32
    return %c0_i32, %c0_i32_0 : i32, i32
  }
  func.func @transform_10(%arg0: i32) -> (i32, i32) {
    %c0_i32 = arith.constant 0 : i32
    %c0_i32_0 = arith.constant 0 : i32
    return %arg0, %c0_i32 : i32, i32
  }
}

</mosaic_0001>

<bundles_post_ra>
// kernel: tpu_custom_call.1
= control target key start
LH: loop header
LB: loop body
LE: loop exit
PB: predicated region body
PF: predicated region fallthrough
CT: control target
= control target key end

     0   :  { %16 = vsyncpa [#allocation4], 0  ;;  %s538_s0 = inlined_call_operand.<no memory space> [shape: f32[1,1], index: 0, kind: input, shape index: {}]   ;;  %s539_s1 = inlined_call_operand.vmem [shape: f32[8,8], index: 1, kind: input, shape index: {}]   ;;  %s540_s2 = inlined_call_operand.vmem [shape: f32[8,4], index: 2, kind: input, shape index: {}]   ;;  %s541_s3 = inlined_call_operand.vmem [shape: f32[1,4], index: 3, kind: input, shape index: {}]   ;;  %s542_s4 = inlined_call_operand.vmem [shape: bf16[8,128], index: 4, kind: input, shape index: {}]   ;;  %s543_s5 = inlined_call_operand.vmem [shape: f32[1,128], index: 5, kind: input, shape index: {}]   ;;  %s544_s6 = inlined_call_operand.hbm [shape: bf16[128,128], index: 6, kind: input, shape index: {}]   ;;  %s545_s7 = inlined_call_operand.vmem [shape: f32[1,128], index: 7, kind: input, shape index: {}]   ;;  %s546_s8 = inlined_call_operand.hbm [shape: bf16[128,128], index: 8, kind: input, shape index: {}]   ;;  %s547_s9 = inlined_call_operand.vmem [shape: f32[1,128], index: 9, kind: input, shape index: {}]   ;;  %s548_s10 = inlined_call_operand.vmem [shape: f32[8,2], index: 10, kind: output, shape index: {}]  }
   0x1   :  { %s34_s15 = sshll.u32 %s544_s6, 4  ;;  %s35_s15 = int_to_ptr.hbm [resolvable:$true] %s34_s15 }
   0x2   :  { %17 = vsyncpa [#allocation6], 0  ;;  %s442_s16 = smov [#allocation3]   ;;  %s49_s20 = sshll.u32 %s546_s8, 4  ;;  %s50_s20 = int_to_ptr.hbm [resolvable:$true] %s49_s20 }
   0x3   :  { %s36_s17 = sshll.u32 %s442_s16, 4  ;;  %s443_s21 = smov 64   ;;  %s37_s17 = int_to_ptr.vmem [resolvable:$true] %s36_s17 }
   0x4   :  { %s444_s22 = smov 4   ;;  %s445_s23 = smov [#allocation5]  }
   0x5   :  { %42 = dma.hbm_to_vmem [thread:$0]  %s35_s15, 1024, %s37_s17, [#allocation4], %s443_s21, %s443_s21, %s444_s22  }
   0x6   :  { %s51_s24 = sshll.u32 %s445_s23, 4  ;;  %s52_s24 = int_to_ptr.vmem [resolvable:$true] %s51_s24 }
   0x7   :  { %57 = dma.hbm_to_vmem [thread:$0]  %s50_s20, 1024, %s52_s24, [#allocation6], %s443_s21, %s443_s21, %s444_s22  }
   0x8   :  { %438 = dma.done.wait [#allocation4], 1024  }
   0x9   :  { %439 = vsyncadd [#allocation4], 4294966272 }
   0xa   :  { %440 = dma.done.wait [#allocation6], 1024  }
   0xb   :  { %441 = vsyncadd [#allocation6], 4294966272  ;;  %vm80_vm0 = vcmask 1043456   ;;  %v71_v0 = vld [vmem:[%s542_s4] sm:$0xf]  ;;  %v366_v2 = vld [vmem:[#allocation3 + $0x38] sm:$0xff]  ;;  %v278_v43 = vstv %s538_s0 }
   0xc   :  { %v69_v1 = vld [vmem:[%s539_s1] sm:$0xff]  ;;  %v82_v3 = vsel %vm80_vm0, %v71_v0, 0  ;;  %vm76_vm1 = vcmask 64512   ;;  %167 = vmatpush.bf16.msra.mxu1 %v366_v2  ;;  %v365_v5 = vld [vmem:[#allocation3 + $0x30] sm:$0xff]  ;;  %v364_v6 = vld [vmem:[#allocation3 + $0x28] sm:$0xff]  ;;  %vm272_vm2 = vcmask 31744  }
   0xd   :  { %v70_v4 = vpack.c.bf16 %v69_v1, %v69_v1  ;;  %91 = vmatpush.bf16.msra.mxu0 %v82_v3  ;;  %v363_v7 = vld [vmem:[#allocation3 + $0x20] sm:$0xff]  ;;  %v362_v8 = vld [vmem:[#allocation3 + $0x18] sm:$0xff]  ;;  %v361_v9 = vld [vmem:[#allocation3 + $0x10] sm:$0xff]  ;;  %vm280_vm3 = vcmask 7168   ;;  %vm286_vm4 = vcmask 15368  }
   0xe   :  { %v360_v10 = vld [vmem:[#allocation3 + $0x8] sm:$0xff]  ;;  %v359_v11 = vld [vmem:[#allocation3] sm:$0xff]  ;;  %v374_v12 = vld [vmem:[#allocation5 + $0x38] sm:$0xff] }
   0xf   :  { %250 = vmatpush.bf16.msra.mxu2 %v374_v12  ;;  %v373_v13 = vld [vmem:[#allocation5 + $0x30] sm:$0xff]  ;;  %v372_v14 = vld [vmem:[#allocation5 + $0x28] sm:$0xff]  ;;  %v371_v15 = vld [vmem:[#allocation5 + $0x20] sm:$0xff] }
  0x10   :  { %294 = vmatmul.msk.bf16.vlgmr.msra.gmra.mxu0 %vm76_vm1, %v70_v4  ;;  %168 = vmatpush.bf16.msra.mxu1 %v365_v5  ;;  %v370_v16 = vld [vmem:[#allocation5 + $0x18] sm:$0xff]  ;;  %v380_v17 = vld [vmem:[%s543_s5] ss:$0 sm:$0xff]  ;;  %v369_v23 = vld [vmem:[#allocation5 + $0x10] sm:$0xff] }
  0x11   :  { %v368_v24 = vld [vmem:[#allocation5 + $0x8] sm:$0xff]  ;;  %v367_v25 = vld [vmem:[#allocation5] sm:$0xff] }
  0x12   :  { %v381_v26 = vld [vmem:[%s545_s7] ss:$0 sm:$0xff] }
  0x13   :  { %251 = vmatpush.bf16.msra.mxu2 %v373_v13  ;;  %v382_v32 = vld [vmem:[%s547_s9] ss:$0 sm:$0xff]  ;;  %s446_s9 = smov 125  }
  0x14   :  { %169 = vmatpush.bf16.msra.mxu1 %v364_v6  ;;  %v264_v35 = vld [vmem:[%s540_s2] sm:$0xff] }
  0x15   :  { %v383_v39 = vld [vmem:[%s541_s3] ss:$0 sm:$0xff] }
  0x17   :  { %252 = vmatpush.bf16.msra.mxu2 %v372_v14 }
  0x18   :  { %170 = vmatpush.bf16.msra.mxu1 %v363_v7 }
  0x1b   :  { %253 = vmatpush.bf16.msra.mxu2 %v371_v15 }
  0x1c   :  { %171 = vmatpush.bf16.msra.mxu1 %v362_v8 }
  0x1f   :  { %254 = vmatpush.bf16.msra.mxu2 %v370_v16 }
  0x20   :  { %172 = vmatpush.bf16.msra.mxu1 %v361_v9 }
  0x23   :  { %255 = vmatpush.bf16.msra.mxu2 %v369_v23 }
  0x24   :  { %173 = vmatpush.bf16.msra.mxu1 %v360_v10 }
  0x27   :  { %256 = vmatpush.bf16.msra.mxu2 %v368_v24 }
  0x28   :  { %174 = vmatpush.bf16.msra.mxu1 %v359_v11 }
  0x2b   :  { %257 = vmatpush.bf16.msra.mxu2 %v367_v25 }
  0x8d   :  { %v93_v18 = vpop.f32.mrf.mxu0 }
  0x8e   :  { %v94_v19 = vadd.f32 %v380_v17, %v93_v18 }
  0x90   :  { %384 = vtanh.f32 %v94_v19 }
  0x95   :  { %v95_v20 = vpop.f32.mrf.mxu0 }
  0x96   :  { %v385_v21 = vpop.eup %384 }
  0x97   :  { %v98_v22 = vpack.c.bf16 %v385_v21, %v385_v21 }
  0x99   :  { %175 = vmatmul.bf16.vlgmr.msra.gmra.mxu1 %v98_v22 }
 0x116   :  { %v176_v27 = vpop.f32.mrf.mxu1 }
 0x117   :  { %v177_v28 = vadd.f32 %v381_v26, %v176_v27 }
 0x119   :  { %386 = vtanh.f32 %v177_v28 }
 0x11e   :  { %v178_v29 = vpop.f32.mrf.mxu1 }
 0x11f   :  { %v387_v30 = vpop.eup %386 }
 0x120   :  { %v181_v31 = vpack.c.bf16 %v387_v30, %v387_v30 }
 0x122   :  { %258 = vmatmul.bf16.vlgmr.msra.gmra.mxu2 %v181_v31 }
 0x1a5   :  { %v259_v33 = vpop.f32.mrf.mxu2 }
 0x1a6   :  { %v260_v34 = vadd.f32 %v382_v32, %v259_v33 }
 0x1a8   :  { %388 = vtanh.f32 %v260_v34 }
 0x1ad   :  { %v261_v36 = vpop.f32.mrf.mxu2 }
 0x1ae   :  { %v389_v37 = vpop.eup %388 }
 0x1af   :  { %v265_v38 = vsub.f32 %v264_v35, %v389_v37 }
 0x1b1   :  { %v266_v40 = vmul.f32 %v265_v38, %v265_v38 }
 0x1b3   :  { %v271_v41 = vmul.f32 %v383_v39, %v266_v40 }
 0x1b5   :  { %v273_v42 = vsel %vm272_vm2, %v271_v41, 0.0 }
 0x1b6   :  { %274 = vadd.xlane.f32.xlu0 %v273_v42 }
 0x1ca   :  { %283 = vrot.lane.b32.xlu0 %v260_v34, %s446_s9 }
 0x229   :  { %v275_v44 = vpop.xlane.xlu0 %274 }
 0x22a   :  { %v276_v45 = vmul.f32 -0.5, %v275_v44 }
 0x22c   :  { %v279_v46 = vadd.f32 %v278_v43, %v276_v45 }
 0x22e   :  { %281 = vst.msk [vmem:[%s548_s10] sm:$0xff] %vm280_vm3, %v279_v46 }
 0x23c   :  { %v284_v47 = vpop.permute.xlu0 %283 }
 0x23d   :  { %287 = vst.msk [vmem:[%s548_s10] sm:$0xff] %vm286_vm4, %v284_v47 }
 0x23e   :  { %292 = vsyncpa [#allocation4], 1 }
 0x23f   :  { %293 = vsyncpa [#allocation6], 1 }

</bundles_post_ra>
